<compile_context>
chip_gen: v7x
topology: tpu7x:2x2x1
jax: 0.10.0
libtpu: 0.0.40
codegen_flags: <defaults>
</compile_context>

<pallas_src>
import functools

import jax
import jax.numpy as jnp
import numpy as np
from jax import lax
from jax.experimental import pallas as pl
from jax.experimental.pallas import tpu as pltpu


def _contrastive_loss_kernel(feat_ref, lab_ref, rfeat_ref, rlab_ref, out_ref,
                             sum_ref, cnt_ref, *, inv_temperature):
    step = pl.program_id(0)

    @pl.when(step == 0)
    def _init():
        sum_ref[...] = jnp.zeros_like(sum_ref)
        cnt_ref[...] = jnp.zeros_like(cnt_ref)

    feat = feat_ref[...]          # (Bt, 1, D)  bf16/f32
    lab = lab_ref[...]            # (Bt, 1)     i32
    rfeat = rfeat_ref[...]        # (Bt, K, D)  bf16/f32
    rlab = rlab_ref[...]          # (Bt, K)     i32

    eps2 = jnp.float32(1e-24)     # (F.normalize eps = 1e-12) ** 2

    # Raw anchor·retrieved dot products on the MXU, f32 accumulation.
    raw = jnp.einsum("bqd,bkd->bqk", feat, rfeat,
                     preferred_element_type=jnp.float32)[:, 0, :]        # (Bt, K)

    # Squared L2 norms in f32; normalization fused into the similarity scale
    # (each norm clamped separately, preserving F.normalize semantics).
    f_sq = jnp.sum(jnp.square(feat.astype(jnp.float32)), axis=2)         # (Bt, 1)
    r_sq = jnp.sum(jnp.square(rfeat.astype(jnp.float32)), axis=2)        # (Bt, K)

    f_scale = lax.rsqrt(jnp.maximum(f_sq, eps2)) * jnp.float32(inv_temperature)
    r_scale = lax.rsqrt(jnp.maximum(r_sq, eps2))
    sim = raw * f_scale * r_scale                                        # (Bt, K)

    pos_mask = (rlab == lab).astype(jnp.float32)                         # (Bt, K)
    valid_mask = (rlab != -1).astype(jnp.float32)                        # (Bt, K)
    has_pos = jnp.sum(pos_mask * valid_mask, axis=1, keepdims=True) > 0.0

    # |sim| <= inv_temperature (inputs are L2-normalized), so exp cannot overflow
    # at the default temperature; the isfinite guard mirrors the PyTorch reference.
    exp_sim = jnp.exp(sim) * valid_mask
    pos_sum = jnp.sum(exp_sim * pos_mask, axis=1, keepdims=True) + 1e-10  # (Bt, 1)
    all_sum = jnp.sum(exp_sim, axis=1, keepdims=True) + 1e-10             # (Bt, 1)
    sample_loss = -jnp.log(pos_sum / all_sum)                             # (Bt, 1)

    valid = jnp.logical_and(has_pos, jnp.isfinite(sample_loss))           # (Bt, 1)

    sum_ref[...] += jnp.sum(jnp.where(valid, sample_loss, 0.0), axis=0, keepdims=True)
    cnt_ref[...] += jnp.sum(valid.astype(jnp.float32), axis=0, keepdims=True)

    @pl.when(step == pl.num_programs(0) - 1)
    def _finalize():
        total = sum_ref[...]
        count = cnt_ref[...]
        out_ref[...] = jnp.where(count > 0.0, total / jnp.maximum(count, 1.0),
                                 jnp.float32(0.0))


def _round_up(x, m):
    return (x + m - 1) // m * m


def _choose_block_b(B, K, D, itemsize, vmem_budget_bytes=4 * 1024 * 1024):
    # Largest batch tile (multiple of 8) whose retrieval block fits the per-buffer
    # budget; with double-buffering this stays well inside scoped VMEM on
    # v5e (16 MiB default), v6e (32 MiB) and v7x (32 MiB scoped / 64 MiB physical).
    bb = vmem_budget_bytes // max(1, K * D * itemsize)
    bb = int(max(8, min(512, bb)))
    bb -= bb % 8
    bb = min(bb, _round_up(B, 8))
    return max(8, bb)


def simple_contrastive_loss(features, labels, retrieval_features, retrieval_labels,
                            temperature=0.07, block_b=None):
    B, D = features.shape
    Br, K, Dr = retrieval_features.shape
    assert Br == B and Dr == D, "batch / feature-dim mismatch"

    # Keep the caller's dtype (bf16 recommended): no f32 upcast in the wrapper,
    # the kernel normalizes and accumulates in f32.
    feat = features.reshape(B, 1, D)
    rfeat = retrieval_features
    lab = labels.reshape(B, 1).astype(jnp.int32)
    rlab = retrieval_labels.astype(jnp.int32)

    itemsize = jnp.dtype(rfeat.dtype).itemsize
    if block_b is None:
        block_b = _choose_block_b(B, K, D, itemsize)
    block_b = max(8, (int(block_b) // 8) * 8)

    B_pad = _round_up(B, block_b)
    pad = B_pad - B
    if pad:
        feat = jnp.pad(feat, ((0, pad), (0, 0), (0, 0)))
        lab = jnp.pad(lab, ((0, pad), (0, 0)))
        rfeat = jnp.pad(rfeat, ((0, pad), (0, 0), (0, 0)))
        # padded retrieval labels = -1  ->  masked out as invalid inside the kernel
        rlab = jnp.pad(rlab, ((0, pad), (0, 0)), constant_values=-1)

    grid = (B_pad // block_b,)
    kernel = functools.partial(_contrastive_loss_kernel,
                               inv_temperature=float(1.0 / temperature))

    out = pl.pallas_call(
        kernel,
        out_shape=jax.ShapeDtypeStruct((1, 1), jnp.float32),
        grid=grid,
        in_specs=[
            pl.BlockSpec((block_b, 1, D), lambda b: (b, 0, 0)),   # anchors
            pl.BlockSpec((block_b, 1), lambda b: (b, 0)),          # labels
            pl.BlockSpec((block_b, K, D), lambda b: (b, 0, 0)),    # retrieval feats
            pl.BlockSpec((block_b, K), lambda b: (b, 0)),          # retrieval labels
        ],
        out_specs=pl.BlockSpec((1, 1), lambda b: (0, 0)),
        scratch_shapes=[pltpu.VMEM((1, 1), jnp.float32),           # running sum
                        pltpu.VMEM((1, 1), jnp.float32)],          # running count
        compiler_params=pltpu.CompilerParams(
            dimension_semantics=("arbitrary",),   # B axis carries the accumulator
            vmem_limit_bytes=32 * 1024 * 1024,
        ),
    )(feat, lab, rfeat, rlab)
    return out[0, 0]


def _reference_numpy(features, labels, retrieval_features, retrieval_labels,
                     temperature=0.07):
    """Direct transcription of the PyTorch forward loop (for verification)."""
    features = np.asarray(features, np.float32)
    labels = np.asarray(labels)
    rfeat = np.asarray(retrieval_features, np.float32)
    rlab = np.asarray(retrieval_labels)
    B = features.shape[0]

    def l2norm(x, axis):
        n = np.linalg.norm(x, axis=axis, keepdims=True)
        return x / np.maximum(n, 1e-12)

    f_norm = l2norm(features, 1)
    total, valid = 0.0, 0
    for i in range(B):
        anchor = f_norm[i:i + 1]
        r_norm = l2norm(rfeat[i], 1)
        sim = (anchor @ r_norm.T).squeeze(0) / temperature
        pos = (rlab[i] == labels[i]).astype(np.float32)
        vmask = (rlab[i] != -1).astype(np.float32)
        if (pos * vmask).sum() == 0:
            continue
        e = np.exp(sim) * vmask
        pos_sum = (e * pos).sum() + 1e-10
        all_sum = e.sum() + 1e-10
        sl = -np.log(pos_sum / all_sum)
        if np.isfinite(sl):
            total += sl
            valid += 1
    return np.float32(total / valid) if valid > 0 else np.float32(0.0)


if __name__ == "__main__":
    keys = jax.random.split(jax.random.PRNGKey(0), 2)

    def make_case(key, B, K, D):
        k1, k2, k3, k4 = jax.random.split(key, 4)
        # bf16 inputs (half the HBM bytes for the dominant (B, K, D) operand).
        feats = jax.random.normal(k1, (B, D), dtype=jnp.float32).astype(jnp.bfloat16)
        labs = jax.random.randint(k2, (B,), 0, 3, dtype=jnp.int32)
        rfeats = jax.random.normal(k3, (B, K, D), dtype=jnp.float32).astype(jnp.bfloat16)
        rlabs = jax.random.randint(k4, (B, K), -1, 3, dtype=jnp.int32)  # -1 = invalid
        return feats, labs, rfeats, rlabs

    # Case 1: toy shape, single grid step.
    feats, labs, rfeats, rlabs = make_case(keys[0], B=8, K=8, D=32)
    loss = jax.block_until_ready(
        simple_contrastive_loss(feats, labs, rfeats, rlabs, temperature=0.07))
    ref = _reference_numpy(np.asarray(feats.astype(jnp.float32)), np.asarray(labs),
                           np.asarray(rfeats.astype(jnp.float32)), np.asarray(rlabs),
                           temperature=0.07)
    np.testing.assert_allclose(np.asarray(loss), ref, rtol=1e-3, atol=1e-3)

    # Case 2: B not a multiple of the tile -> exercises padding and multi-step
    # grid accumulation (block_b=8 -> grid of 2, 4 padded rows).
    feats2, labs2, rfeats2, rlabs2 = make_case(keys[1], B=12, K=8, D=32)
    loss2 = jax.block_until_ready(
        simple_contrastive_loss(feats2, labs2, rfeats2, rlabs2,
                                temperature=0.07, block_b=8))
    ref2 = _reference_numpy(np.asarray(feats2.astype(jnp.float32)), np.asarray(labs2),
                            np.asarray(rfeats2.astype(jnp.float32)), np.asarray(rlabs2),
                            temperature=0.07)
    np.testing.assert_allclose(np.asarray(loss2), ref2, rtol=1e-3, atol=1e-3)

    print("KERNEL_OK")
</pallas_src>

<mosaic_0001>
module attributes {stable_mosaic.version = 11 : i64} {
  func.func @_contrastive_loss_kernel(%arg0: i32, %arg1: memref<8x1x32xbf16, #tpu.memory_space<vmem>>, %arg2: memref<8x1xi32, #tpu.memory_space<vmem>>, %arg3: memref<8x8x32xbf16, #tpu.memory_space<vmem>>, %arg4: memref<8x8xi32, #tpu.memory_space<vmem>>, %arg5: memref<1x1xf32, #tpu.memory_space<vmem>>, %arg6: memref<1x1xf32, #tpu.memory_space<vmem>>, %arg7: memref<1x1xf32, #tpu.memory_space<vmem>>) attributes {dimension_semantics = [#tpu.dimension_semantics<arbitrary>], iteration_bounds = array<i64: 1>, scalar_prefetch = 0 : i64, scratch_operands = 2 : i64, tpu.core_type = #tpu.core_type<tc>, window_params = [{transform_indices = @transform_0, window_bounds = array<i64: 8, 1, 32>}, {transform_indices = @transform_1, window_bounds = array<i64: 8, 1>}, {transform_indices = @transform_2, window_bounds = array<i64: 8, 8, 32>}, {transform_indices = @transform_3, window_bounds = array<i64: 8, 8>}, {pipeline_mode = #tpu.pipeline_mode<synchronous>, transform_indices = @transform_4, window_bounds = array<i64: 1, 1>}]} {
    %c0_i32 = arith.constant 0 : i32
    %0 = arith.cmpi eq, %arg0, %c0_i32 : i32
    %1 = arith.extui %0 : i1 to i32
    %c0_i32_0 = arith.constant 0 : i32
    %2 = arith.cmpi ne, %1, %c0_i32_0 : i32
    scf.if %2 {
      %cst_36 = arith.constant 0.000000e+00 : f32
      %74 = vector.broadcast %cst_36 : f32 to vector<1x1xf32>
      %c0_37 = arith.constant 0 : index
      %c0_38 = arith.constant 0 : index
      %75 = vector.load %arg6[%c0_37, %c0_38] : memref<1x1xf32, #tpu.memory_space<vmem>>, vector<1x1xf32>
      tpu.vector_store %arg6[%c0_37, %c0_38], %74 {strides = array<i32>} : memref<1x1xf32, #tpu.memory_space<vmem>>, vector<1x1xf32>,
      %cst_39 = arith.constant 0.000000e+00 : f32
      %76 = vector.broadcast %cst_39 : f32 to vector<1x1xf32>
      %c0_40 = arith.constant 0 : index
      %c0_41 = arith.constant 0 : index
      %77 = vector.load %arg7[%c0_40, %c0_41] : memref<1x1xf32, #tpu.memory_space<vmem>>, vector<1x1xf32>
      tpu.vector_store %arg7[%c0_40, %c0_41], %76 {strides = array<i32>} : memref<1x1xf32, #tpu.memory_space<vmem>>, vector<1x1xf32>,
    } else {
    }
    %c0 = arith.constant 0 : index
    %c0_1 = arith.constant 0 : index
    %c0_2 = arith.constant 0 : index
    %3 = vector.load %arg1[%c0, %c0_1, %c0_2] : memref<8x1x32xbf16, #tpu.memory_space<vmem>>, vector<8x1x32xbf16>
    %c0_3 = arith.constant 0 : index
    %c0_4 = arith.constant 0 : index
    %4 = vector.load %arg2[%c0_3, %c0_4] : memref<8x1xi32, #tpu.memory_space<vmem>>, vector<8x1xi32>
    %c0_5 = arith.constant 0 : index
    %c0_6 = arith.constant 0 : index
    %c0_7 = arith.constant 0 : index
    %5 = vector.load %arg3[%c0_5, %c0_6, %c0_7] : memref<8x8x32xbf16, #tpu.memory_space<vmem>>, vector<8x8x32xbf16>
    %c0_8 = arith.constant 0 : index
    %c0_9 = arith.constant 0 : index
    %6 = vector.load %arg4[%c0_8, %c0_9] : memref<8x8xi32, #tpu.memory_space<vmem>>, vector<8x8xi32>
    "tpu.trace_start"() <{level = 10 : i32, message = "bqd,bkd->bqk"}> : () -> ()
    %cst = arith.constant dense<0.000000e+00> : vector<8x1x8xf32>
    %7 = tpu.matmul %3, %5, %cst {dimension_numbers = #tpu.dot_dimension_numbers<[2], [2], [1], [1], [0, 0, 0, 1, 1, 1], [0], [0]>} : vector<8x1x32xbf16>, vector<8x8x32xbf16>, vector<8x1x8xf32> -> vector<8x1x8xf32>
    "tpu.trace_stop"() : () -> ()
    %8 = vector.shape_cast %7 : vector<8x1x8xf32> to vector<8x8xf32>
    %9 = arith.extf %3 : vector<8x1x32xbf16> to vector<8x1x32xf32>
    %10 = arith.mulf %9, %9 : vector<8x1x32xf32>
    %cst_10 = arith.constant dense<0.000000e+00> : vector<8x1xf32>
    %11 = vector.multi_reduction <add>, %10, %cst_10 [2] : vector<8x1x32xf32> to vector<8x1xf32>
    %12 = arith.extf %5 : vector<8x8x32xbf16> to vector<8x8x32xf32>
    %13 = arith.mulf %12, %12 : vector<8x8x32xf32>
    %cst_11 = arith.constant dense<0.000000e+00> : vector<8x8xf32>
    %14 = vector.multi_reduction <add>, %13, %cst_11 [2] : vector<8x8x32xf32> to vector<8x8xf32>
    %cst_12 = arith.constant 1.000000e-24 : f32
    %15 = vector.broadcast %cst_12 : f32 to vector<8x1xf32>
    %16 = arith.maximumf %11, %15 : vector<8x1xf32>
    %17 = math.rsqrt %16 : vector<8x1xf32>
    %cst_13 = arith.constant 14.2857141 : f32
    %18 = vector.broadcast %cst_13 : f32 to vector<8x1xf32>
    %19 = arith.mulf %17, %18 : vector<8x1xf32>
    %cst_14 = arith.constant 1.000000e-24 : f32
    %20 = vector.broadcast %cst_14 : f32 to vector<8x8xf32>
    %21 = arith.maximumf %14, %20 : vector<8x8xf32>
    %22 = math.rsqrt %21 : vector<8x8xf32>
    %23 = vector.broadcast %19 : vector<8x1xf32> to vector<8x8xf32>
    %24 = arith.mulf %8, %23 : vector<8x8xf32>
    %25 = arith.mulf %24, %22 : vector<8x8xf32>
    %26 = vector.broadcast %4 : vector<8x1xi32> to vector<8x8xi32>
    %27 = arith.cmpi eq, %6, %26 : vector<8x8xi32>
    %28 = arith.extui %27 : vector<8x8xi1> to vector<8x8xi32>
    %29 = arith.sitofp %28 : vector<8x8xi32> to vector<8x8xf32>
    %c-1_i32 = arith.constant -1 : i32
    %30 = vector.broadcast %c-1_i32 : i32 to vector<8x8xi32>
    %31 = arith.cmpi ne, %6, %30 : vector<8x8xi32>
    %32 = arith.extui %31 : vector<8x8xi1> to vector<8x8xi32>
    %33 = arith.sitofp %32 : vector<8x8xi32> to vector<8x8xf32>
    %34 = arith.mulf %29, %33 : vector<8x8xf32>
    %cst_15 = arith.constant dense<0.000000e+00> : vector<8xf32>
    %35 = vector.multi_reduction <add>, %34, %cst_15 [1] : vector<8x8xf32> to vector<8xf32>
    %36 = vector.shape_cast %35 : vector<8xf32> to vector<8x1xf32>
    %cst_16 = arith.constant 0.000000e+00 : f32
    %37 = vector.broadcast %cst_16 : f32 to vector<8x1xf32>
    %38 = arith.cmpf ogt, %36, %37 : vector<8x1xf32>
    %39 = math.exp %25 : vector<8x8xf32>
    %40 = arith.mulf %39, %33 : vector<8x8xf32>
    %41 = arith.mulf %40, %29 : vector<8x8xf32>
    %cst_17 = arith.constant dense<0.000000e+00> : vector<8xf32>
    %42 = vector.multi_reduction <add>, %41, %cst_17 [1] : vector<8x8xf32> to vector<8xf32>
    %43 = vector.shape_cast %42 : vector<8xf32> to vector<8x1xf32>
    %cst_18 = arith.constant 1.000000e-10 : f32
    %44 = vector.broadcast %cst_18 : f32 to vector<8x1xf32>
    %45 = arith.addf %43, %44 : vector<8x1xf32>
    %cst_19 = arith.constant dense<0.000000e+00> : vector<8xf32>
    %46 = vector.multi_reduction <add>, %40, %cst_19 [1] : vector<8x8xf32> to vector<8xf32>
    %47 = vector.shape_cast %46 : vector<8xf32> to vector<8x1xf32>
    %cst_20 = arith.constant 1.000000e-10 : f32
    %48 = vector.broadcast %cst_20 : f32 to vector<8x1xf32>
    %49 = arith.addf %47, %48 : vector<8x1xf32>
    %50 = arith.divf %45, %49 : vector<8x1xf32>
    %51 = math.log %50 : vector<8x1xf32>
    %cst_21 = arith.constant 0.000000e+00 : f32
    %52 = vector.broadcast %cst_21 : f32 to vector<8x1xf32>
    %53 = arith.subf %52, %51 : vector<8x1xf32>
    %54 = tpu.weird %53 : vector<8x1xf32> -> vector<8x1xi1>
    %cst_22 = arith.constant dense<true> : vector<8x1xi1>
    %55 = arith.xori %54, %cst_22 : vector<8x1xi1>
    %56 = arith.andi %38, %55 : vector<8x1xi1>
    %c0_23 = arith.constant 0 : index
    %c0_24 = arith.constant 0 : index
    %57 = vector.load %arg6[%c0_23, %c0_24] : memref<1x1xf32, #tpu.memory_space<vmem>>, vector<1x1xf32>
    %cst_25 = arith.constant 0.000000e+00 : f32
    %58 = vector.broadcast %cst_25 : f32 to vector<8x1xf32>
    %59 = arith.select %56, %53, %58 : vector<8x1xi1>, vector<8x1xf32>
    %cst_26 = arith.constant dense<0.000000e+00> : vector<1xf32>
    %60 = vector.multi_reduction <add>, %59, %cst_26 [0] : vector<8x1xf32> to vector<1xf32>
    %61 = vector.shape_cast %60 : vector<1xf32> to vector<1x1xf32>
    %62 = arith.addf %57, %61 : vector<1x1xf32>
    %c0_27 = arith.constant 0 : index
    %c0_28 = arith.constant 0 : index
    %63 = vector.load %arg6[%c0_27, %c0_28] : memref<1x1xf32, #tpu.memory_space<vmem>>, vector<1x1xf32>
    tpu.vector_store %arg6[%c0_27, %c0_28], %62 {strides = array<i32>} : memref<1x1xf32, #tpu.memory_space<vmem>>, vector<1x1xf32>,
    %c0_29 = arith.constant 0 : index
    %c0_30 = arith.constant 0 : index
    %64 = vector.load %arg7[%c0_29, %c0_30] : memref<1x1xf32, #tpu.memory_space<vmem>>, vector<1x1xf32>
    %65 = arith.extui %56 : vector<8x1xi1> to vector<8x1xi32>
    %66 = arith.sitofp %65 : vector<8x1xi32> to vector<8x1xf32>
    %cst_31 = arith.constant dense<0.000000e+00> : vector<1xf32>
    %67 = vector.multi_reduction <add>, %66, %cst_31 [0] : vector<8x1xf32> to vector<1xf32>
    %68 = vector.shape_cast %67 : vector<1xf32> to vector<1x1xf32>
    %69 = arith.addf %64, %68 : vector<1x1xf32>
    %c0_32 = arith.constant 0 : index
    %c0_33 = arith.constant 0 : index
    %70 = vector.load %arg7[%c0_32, %c0_33] : memref<1x1xf32, #tpu.memory_space<vmem>>, vector<1x1xf32>
    tpu.vector_store %arg7[%c0_32, %c0_33], %69 {strides = array<i32>} : memref<1x1xf32, #tpu.memory_space<vmem>>, vector<1x1xf32>,
    %c0_i32_34 = arith.constant 0 : i32
    %71 = arith.cmpi eq, %arg0, %c0_i32_34 : i32
    %72 = arith.extui %71 : i1 to i32
    %c0_i32_35 = arith.constant 0 : i32
    %73 = arith.cmpi ne, %72, %c0_i32_35 : i32
    scf.if %73 {
      %c0_36 = arith.constant 0 : index
      %c0_37 = arith.constant 0 : index
      %74 = vector.load %arg6[%c0_36, %c0_37] : memref<1x1xf32, #tpu.memory_space<vmem>>, vector<1x1xf32>
      %c0_38 = arith.constant 0 : index
      %c0_39 = arith.constant 0 : index
      %75 = vector.load %arg7[%c0_38, %c0_39] : memref<1x1xf32, #tpu.memory_space<vmem>>, vector<1x1xf32>
      %cst_40 = arith.constant 0.000000e+00 : f32
      %76 = vector.broadcast %cst_40 : f32 to vector<1x1xf32>
      %77 = arith.cmpf ogt, %75, %76 : vector<1x1xf32>
      %cst_41 = arith.constant 1.000000e+00 : f32
      %78 = vector.broadcast %cst_41 : f32 to vector<1x1xf32>
      %79 = arith.maximumf %75, %78 : vector<1x1xf32>
      %80 = arith.divf %74, %79 : vector<1x1xf32>
      %cst_42 = arith.constant 0.000000e+00 : f32
      %81 = vector.broadcast %cst_42 : f32 to vector<1x1xf32>
      %82 = arith.select %77, %80, %81 : vector<1x1xi1>, vector<1x1xf32>
      %c0_43 = arith.constant 0 : index
      %c0_44 = arith.constant 0 : index
      %83 = vector.load %arg5[%c0_43, %c0_44] : memref<1x1xf32, #tpu.memory_space<vmem>>, vector<1x1xf32>
      tpu.vector_store %arg5[%c0_43, %c0_44], %82 {strides = array<i32>} : memref<1x1xf32, #tpu.memory_space<vmem>>, vector<1x1xf32>,
    } else {
    }
    return
  }
  func.func @transform_0(%arg0: i32) -> (i32, i32, i32) {
    %c0_i32 = arith.constant 0 : i32
    %c0_i32_0 = arith.constant 0 : i32
    %c0_i32_1 = arith.constant 0 : i32
    return %arg0, %c0_i32, %c0_i32_0 : i32, i32, i32
  }
  func.func @transform_1(%arg0: i32) -> (i32, i32) {
    %c0_i32 = arith.constant 0 : i32
    %c0_i32_0 = arith.constant 0 : i32
    return %arg0, %c0_i32 : i32, i32
  }
  func.func @transform_2(%arg0: i32) -> (i32, i32, i32) {
    %c0_i32 = arith.constant 0 : i32
    %c0_i32_0 = arith.constant 0 : i32
    %c0_i32_1 = arith.constant 0 : i32
    return %arg0, %c0_i32, %c0_i32_0 : i32, i32, i32
  }
  func.func @transform_3(%arg0: i32) -> (i32, i32) {
    %c0_i32 = arith.constant 0 : i32
    %c0_i32_0 = arith.constant 0 : i32
    return %arg0, %c0_i32 : i32, i32
  }
  func.func @transform_4(%arg0: i32) -> (i32, i32) {
    %c0_i32 = arith.constant 0 : i32
    %c0_i32_0 = arith.constant 0 : i32
    %c0_i32_1 = arith.constant 0 : i32
    return %c0_i32, %c0_i32_0 : i32, i32
  }
}

</mosaic_0001>

<bundles_post_ra>
// kernel: tpu_custom_call.1
= control target key start
LH: loop header
LB: loop body
LE: loop exit
PB: predicated region body
PF: predicated region fallthrough
CT: control target
= control target key end

     0   :  { %9 = vsyncpa [#allocation5], 0  ;;  %s1248_s0 = inlined_call_operand.vmem [shape: bf16[8,1,32], index: 0, kind: input, shape index: {}]   ;;  %s1249_s1 = inlined_call_operand.vmem [shape: s32[8,1], index: 1, kind: input, shape index: {}]   ;;  %s1250_s2 = inlined_call_operand.hbm [shape: bf16[8,8,32], index: 2, kind: input, shape index: {}]   ;;  %s1251_s3 = inlined_call_operand.vmem [shape: s32[8,8], index: 3, kind: input, shape index: {}]   ;;  %s1252_s4 = inlined_call_operand.hbm [shape: f32[1,1], index: 4, kind: output, shape index: {}]  }
   0x1   :  { %10 = vsyncpa [#allocation6], 0  ;;  %s1028_s15 = smov [#allocation4]   ;;  %s980_s19 = scalar_lea.hbm %s1250_s2, 512 }
   0x2   :  { %s20_s16 = sshll.u32 %s1028_s15, 4  ;;  %p981_p0 = scmp.ne.s32.totalorder %s1250_s2, %s980_s19  ;;  %s21_s16 = int_to_ptr.vmem [resolvable:$true] %s20_s16 }
   0x3   :  { %p984_p1 = scmp.lt.u32.totalorder %s980_s19, %s1250_s2 }
   0x5   :  { %p986_p2 = pnand %p984_p1, %p981_p0 }
   0x7   :  { %989 = shalt.err (!%p986_p2)
}
   0x8   :  { %s990_s24 = scalar_lea.vmem %s21_s16, 512  ;;  %p995_p4 = scmp.lt.s32.totalorder %s21_s16, %s21_s16 }
   0x9   :  { %p991_p3 = scmp.ne.s32.totalorder %s21_s16, %s990_s24  ;;  %p996_p5 = scmp.lt.s32.totalorder %s990_s24, %s990_s24 }
   0xb   :  { %p997_p6 = por %p996_p5, %p995_p4 }
   0xd   :  { %p998_p7 = pnand %p997_p6, %p991_p3 }
   0xf   :  { %1001 = shalt.err (!%p998_p7)
}
  0x10   :  { %s1029_s25 = smov 64   ;;  %s1030_s26 = smov 4  }
  0x11   :  { %26 = dma.hbm_to_vmem [thread:$0]  %s1250_s2, 512, %s21_s16, [#allocation5], %s1029_s25, %s1029_s25, %s1030_s26  }
  0x12   :  { %1024 = dma.done.wait [#allocation5], 512  }
  0x13   :  { %1025 = vsyncadd [#allocation5], 4294966784  ;;  %v1031_v0 = vmov 0.0   ;;  %vm1032_vm0 = vmmov 0   ;;  %v1033_v1 = vmov 0   ;;  %vm58_vm1 = vcmask 261120  }
  0x14   :  { %869 = vmatprep.subr.bf16.mxu0 %v1031_v0  ;;  %875 = vmatprep.subr.bf16.mxu1 %v1031_v0  ;;  %v1079_v2 = vld [vmem:[#allocation4] sm:$0xf]  ;;  %v1081_v3 = vld [vmem:[#allocation4 + $0x4] sm:$0xf]  ;;  %v40_v6 = vld [vmem:[%s1248_s0] sm:$0x1] }
  0x15   :  { %871 = vmatprep.mubr.msk.bf16.mxu0 %vm1032_vm0, %v1031_v0  ;;  %877 = vmatprep.mubr.msk.bf16.mxu1 %vm1032_vm0, %v1031_v0  ;;  %v63_v4 = vsel %vm58_vm1, %v1079_v2, 0  ;;  %v109_v5 = vsel %vm58_vm1, %v1081_v3, 0  ;;  %v41_v7 = vld [vmem:[%s1248_s0 + $0x1] sm:$0x1]  ;;  %v42_v8 = vld [vmem:[%s1248_s0 + $0x2] sm:$0x1]  ;;  %v427_v10 = vunpack.c.l.bf16 %v40_v6  ;;  %v469_v37 = vunpack.c.l.bf16 %v1081_v3 }
  0x16   :  { %925 = vset.pattern.permute.xlu0 %v1033_v1  ;;  %870 = vmatpush3.bf16.xpose.msra.mxu0 %v63_v4  ;;  %v428_v9 = vunpack.c.l.bf16 %v41_v7  ;;  %v43_v11 = vld [vmem:[%s1248_s0 + $0x3] sm:$0x1]  ;;  %vm443_vm2 = vcmask 253952   ;;  %v429_v12 = vunpack.c.l.bf16 %v42_v8  ;;  %v51_v13 = vld [vmem:[#allocation4 + $0x8] sm:$0xf]  ;;  %v468_v50 = vunpack.c.l.bf16 %v1079_v2 }
  0x17   :  { %876 = vmatpush3.bf16.xpose.msra.mxu1 %v109_v5  ;;  %881 = vmatprep.subr.bf16.mxu0 %v1031_v0  ;;  %v1101_v14 = vld [vmem:[#allocation4 + $0xc] sm:$0xf]  ;;  %v435_v16 = vmul.f32 %v427_v10, %v427_v10  ;;  %v430_v17 = vunpack.c.l.bf16 %v43_v11  ;;  %v155_v21 = vsel %vm58_vm1, %v51_v13, 0  ;;  %v44_v24 = vld [vmem:[%s1248_s0 + $0x4] sm:$0x1]  ;;  %v470_v44 = vunpack.c.l.bf16 %v51_v13 }
  0x18   :  { %887 = vmatprep.subr.bf16.mxu1 %v1031_v0  ;;  %v436_v15 = vmul.f32 %v428_v9, %v428_v9  ;;  %v437_v19 = vmul.f32 %v429_v12, %v429_v12  ;;  %v201_v22 = vsel %vm58_vm1, %v1101_v14, 0  ;;  %v45_v25 = vld [vmem:[%s1248_s0 + $0x5] sm:$0x1]  ;;  %v431_v27 = vunpack.c.l.bf16 %v44_v24  ;;  %v54_v31 = vld [vmem:[#allocation4 + $0x14] sm:$0xf] }
  0x19   :  { %v438_v20 = vmul.f32 %v430_v17, %v430_v17  ;;  %v444_v23 = vsel %vm443_vm2, %v435_v16, 0.0  ;;  %v432_v29 = vunpack.c.l.bf16 %v45_v25  ;;  %v53_v30 = vld [vmem:[#allocation4 + $0x10] sm:$0xf]  ;;  %v293_v35 = vsel %vm58_vm1, %v54_v31, 0  ;;  %v46_v36 = vld [vmem:[%s1248_s0 + $0x6] sm:$0x1] }
  0x1a   :  { %v447_v18 = vsel %vm443_vm2, %v436_v15, 0.0  ;;  %445 = vadd.xlane.f32.xlu1 %v444_v23  ;;  %v450_v26 = vsel %vm443_vm2, %v437_v19, 0.0  ;;  %v439_v32 = vmul.f32 %v431_v27, %v431_v27  ;;  %v247_v34 = vsel %vm58_vm1, %v53_v30, 0  ;;  %v55_v41 = vld [vmem:[#allocation4 + $0x18] sm:$0xf] }
  0x1b   :  { %448 = vadd.xlane.f32.xlu0 %v447_v18  ;;  %v453_v28 = vsel %vm443_vm2, %v438_v20, 0.0  ;;  %v440_v33 = vmul.f32 %v432_v29, %v432_v29  ;;  %v433_v38 = vunpack.c.l.bf16 %v46_v36  ;;  %v56_v42 = vld [vmem:[#allocation4 + $0x1c] sm:$0xf]  ;;  %v47_v43 = vld [vmem:[%s1248_s0 + $0x7] sm:$0x1]  ;;  %v477_v45 = vmul.f32 %v469_v37, %v469_v37 }
  0x1c   :  { %v456_v39 = vsel %vm443_vm2, %v439_v32, 0.0  ;;  %v434_v47 = vunpack.c.l.bf16 %v47_v43  ;;  %v339_v48 = vsel %vm58_vm1, %v55_v41, 0  ;;  %v385_v49 = vsel %vm58_vm1, %v56_v42, 0 }
  0x1d   :  { %872 = vmatmul.mubr.msk.bf16.vlgmr.msra.gmra.mrb[0].mxu0 %vm58_vm1, %v40_v6  ;;  %v459_v40 = vsel %vm443_vm2, %v440_v33, 0.0  ;;  %v441_v46 = vmul.f32 %v433_v38, %v433_v38  ;;  %v478_v51 = vmul.f32 %v470_v44, %v470_v44  ;;  %v487_v52 = vsel %vm58_vm1, %v477_v45, 0.0 }
  0x1e   :  { %878 = vmatmul.mubr.msk.bf16.vlgmr.msra.gmra.mrb[0].mxu1 %vm58_vm1, %v41_v7  ;;  %882 = vmatpush3.bf16.xpose.msra.mxu0 %v155_v21  ;;  %v442_v54 = vmul.f32 %v434_v47, %v434_v47  ;;  %v471_v55 = vunpack.c.l.bf16 %v1101_v14  ;;  %v476_v57 = vmul.f32 %v468_v50, %v468_v50  ;;  %v472_v60 = vunpack.c.l.bf16 %v53_v30 }
  0x1f   :  { %888 = vmatpush3.bf16.xpose.msra.mxu1 %v201_v22  ;;  %883 = vmatprep.mubr.msk.bf16.mxu0 %vm1032_vm0, %v1031_v0  ;;  %v462_v53 = vsel %vm443_vm2, %v441_v46, 0.0  ;;  %v490_v56 = vsel %vm58_vm1, %v478_v51, 0.0  ;;  %v473_v61 = vunpack.c.l.bf16 %v54_v31  ;;  %v474_v63 = vunpack.c.l.bf16 %v55_v41 }
  0x20   :  { %889 = vmatprep.mubr.msk.bf16.mxu1 %vm1032_vm0, %v1031_v0  ;;  %893 = vmatprep.subr.bf16.mxu0 %v1031_v0  ;;  %v465_v58 = vsel %vm443_vm2, %v442_v54, 0.0  ;;  %v479_v59 = vmul.f32 %v471_v55, %v471_v55  ;;  %v484_v62 = vsel %vm58_vm1, %v476_v57, 0.0  ;;  %v480_v2 = vmul.f32 %v472_v60, %v472_v60 }
  0x21   :  { %899 = vmatprep.subr.bf16.mxu1 %v1031_v0  ;;  %451 = vadd.xlane.f32.xlu0 %v450_v26  ;;  %v481_v3 = vmul.f32 %v473_v61, %v473_v61  ;;  %v475_v4 = vunpack.c.l.bf16 %v56_v42  ;;  %v482_v7 = vmul.f32 %v474_v63, %v474_v63  ;;  %v548_v27 = vlaneseq }
  0x22   :  { %454 = vadd.xlane.f32.xlu1 %v453_v28  ;;  %v493_v1 = vsel %vm58_vm1, %v479_v59, 0.0  ;;  %v496_v5 = vsel %vm58_vm1, %v480_v2, 0.0  ;;  %vm734_vm5 = vcmask 1041409   ;;  %vm737_vm6 = vcmask 1042434  }
  0x23   :  { %v499_v6 = vsel %vm58_vm1, %v481_v3, 0.0  ;;  %v502_v9 = vsel %vm58_vm1, %v482_v7, 0.0  ;;  %v549_v31 = vshrl.u32 %v548_v27, 7  ;;  %vm740_vm7 = vcmask 1043459  }
  0x24   :  { %vm743_vm8 = vcmask 1044484   ;;  %vm746_vm9 = vcmask 1045509   ;;  %vm749_vm10 = vcmask 1046534   ;;  %vm752_vm11 = vcmask 1047559  }
  0x25   :  { %884 = vmatmul.mubr.msk.bf16.vlgmr.msra.gmra.mrb[4].mxu0 %vm58_vm1, %v42_v8  ;;  %457 = vadd.xlane.f32.xlu0 %v456_v39  ;;  %v483_v8 = vmul.f32 %v475_v4, %v475_v4  ;;  %v1172_v37 = vsub.s32 0, %v549_v31  ;;  %vm656_vm12 = vcmask 64512   ;;  %vm37_vm13 = vcmask 0  }
  0x26   :  { %890 = vmatmul.mubr.msk.bf16.vlgmr.msra.gmra.mrb[4].mxu1 %vm58_vm1, %v43_v11  ;;  %894 = vmatpush3.bf16.xpose.msra.mxu0 %v247_v34  ;;  %v48_v11 = vld [vmem:[%s1249_s1] sm:$0xff]  ;;  %38 = vst.msk [vmem:[#allocation2] sm:$0x1] %vm37_vm13, %v1031_v0  ;;  %39 = vst.msk [vmem:[#allocation3] sm:$0x1] %vm37_vm13, %v1031_v0  ;;  %vm1034_vm15 = vmmov 1  }
  0x27   :  { %900 = vmatpush3.bf16.xpose.msra.mxu1 %v293_v35  ;;  %895 = vmatprep.mubr.msk.bf16.mxu0 %vm1032_vm0, %v1031_v0  ;;  %v505_v10 = vsel %vm58_vm1, %v483_v8, 0.0 }
  0x28   :  { %901 = vmatprep.mubr.msk.bf16.mxu1 %vm1032_vm0, %v1031_v0  ;;  %905 = vmatprep.subr.bf16.mxu0 %v1031_v0 }
  0x29   :  { %911 = vmatprep.subr.bf16.mxu1 %v1031_v0  ;;  %460 = vadd.xlane.f32.xlu1 %v459_v40 }
  0x2a   :  { %488 = vadd.xlane.f32.xlu0 %v487_v52 }
  0x2d   :  { %896 = vmatmul.mubr.msk.bf16.vlgmr.msra.gmra.mrb[8].mxu0 %vm58_vm1, %v44_v24  ;;  %463 = vadd.xlane.f32.xlu1 %v462_v53 }
  0x2e   :  { %902 = vmatmul.mubr.msk.bf16.vlgmr.msra.gmra.mrb[8].mxu1 %vm58_vm1, %v45_v25  ;;  %906 = vmatpush3.bf16.xpose.msra.mxu0 %v339_v48 }
  0x2f   :  { %912 = vmatpush3.bf16.xpose.msra.mxu1 %v385_v49  ;;  %907 = vmatprep.mubr.msk.bf16.mxu0 %vm1032_vm0, %v1031_v0 }
  0x30   :  { %913 = vmatprep.mubr.msk.bf16.mxu1 %vm1032_vm0, %v1031_v0  ;;  %491 = vadd.xlane.f32.xlu0 %v490_v56 }
  0x31   :  { %466 = vadd.xlane.f32.xlu1 %v465_v58 }
  0x34   :  { %485 = vadd.xlane.f32.xlu0 %v484_v62 }
  0x35   :  { %908 = vmatmul.mubr.msk.bf16.vlgmr.msra.gmra.mrb[12].mxu0 %vm58_vm1, %v46_v36  ;;  %494 = vadd.xlane.f32.xlu1 %v493_v1  ;;  %v597_v36 = vand.u32 127, %v548_v27 }
  0x36   :  { %914 = vmatmul.mubr.msk.bf16.vlgmr.msra.gmra.mrb[12].mxu1 %vm58_vm1, %v47_v43 }
  0x37   :  { %v1174_v44 = vsub.s32 %v597_v36, %v549_v31 }
  0x38   :  { %497 = vadd.xlane.f32.xlu0 %v496_v5 }
  0x39   :  { %500 = vadd.xlane.f32.xlu1 %v499_v6 }
  0x3c   :  { %503 = vadd.xlane.f32.xlu0 %v502_v9 }
  0x3d   :  { %506 = vadd.xlane.f32.xlu1 %v505_v10 }
  0x52   :  { %647 = vperm.xlu0 %925, %v48_v11  }
  0xa7   :  { %v446_v14 = vpop.xlane.xlu1 %445 }
  0xa8   :  { %v449_v12 = vpop.xlane.xlu0 %448  ;;  %v508_v22 = vmax.f32 %v446_v14, 1e-24 }
  0xa9   :  { %v509_v20 = vmax.f32 %v449_v12, 1e-24  ;;  %v57_v12 = vld [vmem:[%s1251_s3] sm:$0xff]  ;;  %s1035_s3 = smov [#allocation7]  }
  0xaa   :  { %vm652_vm3 = vcmp.ne.s32.totalorder %v57_v12, 4294967295  ;;  %s833_s20 = sshll.u32 %s1035_s3, 4  ;;  %s834_s20 = int_to_ptr.vmem [resolvable:$true] %s833_s20 }
  0xab   :  { %926 = vrsqrt.f32 %v509_v20  ;;  %s1002_s21 = scalar_lea.vmem %s834_s20, 16  ;;  %s1006_s22 = scalar_lea.vmem %s834_s20, 32 }
  0xac   :  { %928 = vrsqrt.f32 %v508_v22  ;;  %p1003_p8 = scmp.ne.s32.totalorder %s834_s20, %s1002_s21  ;;  %p1007_p9 = scmp.lt.s32.totalorder %s834_s20, %s834_s20 }
  0xad   :  { %p1008_p10 = scmp.lt.s32.totalorder %s1006_s22, %s1002_s21 }
  0xae   :  { %v452_v13 = vpop.xlane.xlu0 %451 }
  0xaf   :  { %v455_v16 = vpop.xlane.xlu1 %454  ;;  %v510_v28 = vmax.f32 %v452_v13, 1e-24  ;;  %p1009_p11 = por %p1008_p10, %p1007_p9 }
  0xb0   :  { %v511_v29 = vmax.f32 %v455_v16, 1e-24 }
  0xb1   :  { %p1010_p12 = pnand %p1009_p11, %p1003_p8 }
  0xb2   :  { %v458_v15 = vpop.xlane.xlu0 %457 }
  0xb3   :  { %v512_v40 = vmax.f32 %v458_v15, 1e-24 }
  0xb5   :  { %v927_v32 = vpop.eup %926 }
  0xb6   :  { %v461_v18 = vpop.xlane.xlu1 %460  ;;  %v929_v34 = vpop.eup %928  ;;  %v525_v38 = vmul.f32 14.285714, %v927_v32 }
  0xb7   :  { %v489_v17 = vpop.xlane.xlu0 %488  ;;  %v524_v39 = vmul.f32 14.285714, %v929_v34  ;;  %v513_v41 = vmax.f32 %v461_v18, 1e-24 }
  0xb8   :  { %v533_v24 = vmax.f32 %v489_v17, 1e-24  ;;  %v555_v48 = vrot.slane %v525_v38, %v1172_v37 }
  0xb9   :  { %v551_v47 = vrot.slane %v524_v39, %v1172_v37 }
  0xba   :  { %v1168_v21 = vpop.xlane.xlu1 %463  ;;  %930 = vrsqrt.f32 %v533_v24 }
  0xbb   :  { %v514_v57 = vmax.f32 %v1168_v21, 1e-24 }
  0xbd   :  { %v492_v19 = vpop.xlane.xlu0 %491 }
  0xbe   :  { %v1170_v25 = vpop.xlane.xlu1 %466  ;;  %v534_v33 = vmax.f32 %v492_v19, 1e-24 }
  0xbf   :  { %v515_v60 = vmax.f32 %v1170_v25, 1e-24 }
  0xc1   :  { %v486_v23 = vpop.xlane.xlu0 %485 }
  0xc2   :  { %v532_v26 = vmax.f32 %v486_v23, 1e-24  ;;  %v495_v30 = vpop.xlane.xlu1 %494 }
  0xc3   :  { %v535_v35 = vmax.f32 %v495_v30, 1e-24 }
  0xc4   :  { %932 = vrsqrt.f32 %v532_v26  ;;  %v931_v43 = vpop.eup %930 }
  0xc5   :  { %934 = vrsqrt.f32 %v510_v28  ;;  %v498_v42 = vpop.xlane.xlu0 %497  ;;  %v605_v53 = vrot.slane %v931_v43, %v1174_v44 }
  0xc6   :  { %936 = vrsqrt.f32 %v511_v29  ;;  %v501_v45 = vpop.xlane.xlu1 %500  ;;  %v536_v49 = vmax.f32 %v498_v42, 1e-24 }
  0xc7   :  { %938 = vrsqrt.f32 %v534_v33  ;;  %v537_v50 = vmax.f32 %v501_v45, 1e-24  ;;  %v1191_v33 = vsel %vm652_vm3, 1.0, %v1031_v0 }
  0xc8   :  { %940 = vrsqrt.f32 %v535_v35 }
  0xc9   :  { %942 = vrsqrt.f32 %v512_v40  ;;  %v504_v54 = vpop.xlane.xlu0 %503 }
  0xca   :  { %944 = vrsqrt.f32 %v513_v41  ;;  %v507_v55 = vpop.xlane.xlu1 %506  ;;  %v538_v5 = vmax.f32 %v504_v54, 1e-24 }
  0xcb   :  { %946 = vrsqrt.f32 %v536_v49  ;;  %v539_v16 = vmax.f32 %v507_v55, 1e-24 }
  0xcc   :  { %948 = vrsqrt.f32 %v537_v50 }
  0xcd   :  { %950 = vrsqrt.f32 %v514_v57 }
  0xce   :  { %v933_v46 = vpop.eup %932  ;;  %952 = vrsqrt.f32 %v515_v60 }
  0xcf   :  { %v935_v51 = vpop.eup %934  ;;  %v601_v52 = vrot.slane %v933_v46, %v1174_v44  ;;  %954 = vrsqrt.f32 %v538_v5 }
  0xd0   :  { %v937_v56 = vpop.eup %936  ;;  %v526_v2 = vmul.f32 14.285714, %v935_v51 }
  0xd1   :  { %v939_v6 = vpop.eup %938  ;;  %v527_v7 = vmul.f32 14.285714, %v937_v56  ;;  %v648_v22 = vpop.permute.xlu0 %647 }
  0xd2   :  { %v941_v13 = vpop.eup %940  ;;  %v559_v17 = vrot.slane %v526_v2, %v1172_v37  ;;  %v609_v19 = vrot.slane %v939_v6, %v1174_v44  ;;  %vm649_vm4 = vcmp.eq.s32.totalorder %v57_v12, %v648_v22  ;;  %v680_v12 = vrot.slane %v1191_v33, 3 }
  0xd3   :  { %v943_v18 = vpop.eup %942  ;;  %v563_v20 = vrot.slane %v527_v7, %v1172_v37  ;;  %v613_v21 = vrot.slane %v941_v13, %v1174_v44  ;;  %v1194_v46 = vsel %vm649_vm4, 1.0, %v1031_v0 }
  0xd4   :  { %v945_v23 = vpop.eup %944  ;;  %v528_v30 = vmul.f32 14.285714, %v943_v18  ;;  %v702_v57 = vrot.slane %v1194_v46, 1 }
  0xd5   :  { %v947_v34 = vpop.eup %946  ;;  %v529_v35 = vmul.f32 14.285714, %v945_v23 }
  0xd6   :  { %v949_v41 = vpop.eup %948  ;;  %v617_v50 = vrot.slane %v947_v34, %v1174_v44 }
  0xd7   :  { %v951_v45 = vpop.eup %950  ;;  %v571_v51 = vrot.slane %v529_v35, %v1172_v37 }
  0xd8   :  { %v953_v49 = vpop.eup %952 }
  0xf0   :  { %v99_v58 = vpop.f32.mrb[0].mxu0 }
  0xf1   :  { %v145_v59 = vpop.f32.mrb[0].mxu1  ;;  %v580_v61 = vmul.f32 %v551_v47, %v99_v58  ;;  %v873_v63 = vpop.f32.mrb[1].mxu0  ;;  %v567_v47 = vrot.slane %v528_v30, %v1172_v37 }
  0xf2   :  { %v581_v62 = vmul.f32 %v555_v48, %v145_v59  ;;  %v879_v1 = vpop.f32.mrb[1].mxu1  ;;  %v102_v3 = vpop.f32.mrb[2].mxu0  ;;  %v678_v48 = vrot.slane %v1191_v33, 1  ;;  %v530_v63 = vmul.f32 14.285714, %v951_v45 }
  0xf3   :  { %v148_v4 = vpop.f32.mrb[2].mxu1  ;;  %v638_v8 = vmul.f32 %v601_v52, %v580_v61  ;;  %v874_v11 = vpop.f32.mrb[3].mxu0  ;;  %v621_v52 = vrot.slane %v949_v41, %v1174_v44  ;;  %v531_v1 = vmul.f32 14.285714, %v953_v49 }
  0xf4   :  { %v639_v9 = vmul.f32 %v605_v53, %v581_v62  ;;  %v880_v10 = vpop.f32.mrb[3].mxu1  ;;  %v955_v53 = vpop.eup %954  ;;  %v679_v11 = vrot.slane %v1191_v33, 2 }
  0xf5   :  { %v661_v14 = vmul.f32 1.442695, %v638_v8  ;;  %v625_v18 = vrot.slane %v955_v53, %v1174_v44 }
  0xf6   :  { %v663_v15 = vmul.f32 1.442695, %v639_v9 }
  0xf7   :  { %956 = vpow2.f32 %v661_v14 }
  0xf8   :  { %958 = vpow2.f32 %v663_v15  ;;  %v191_v24 = vpop.f32.mrb[4].mxu0 }
  0xf9   :  { %v237_v25 = vpop.f32.mrb[4].mxu1  ;;  %v582_v26 = vmul.f32 %v559_v17, %v191_v24  ;;  %v885_v28 = vpop.f32.mrb[5].mxu0  ;;  %960 = vrsqrt.f32 %v539_v16  ;;  %v575_v17 = vrot.slane %v530_v63, %v1172_v37 }
  0xfa   :  { %v583_v27 = vmul.f32 %v563_v20, %v237_v25  ;;  %v891_v29 = vpop.f32.mrb[5].mxu1  ;;  %v194_v31 = vpop.f32.mrb[6].mxu0 }
  0xfb   :  { %v240_v32 = vpop.f32.mrb[6].mxu1  ;;  %v640_v36 = vmul.f32 %v609_v19, %v582_v26  ;;  %v886_v40 = vpop.f32.mrb[7].mxu0  ;;  %v579_v19 = vrot.slane %v531_v1, %v1172_v37  ;;  %v703_v26 = vrot.slane %v1194_v46, 2  ;;  %v704_v37 = vrot.slane %v1194_v46, 3 }
  0xfc   :  { %v641_v38 = vmul.f32 %v613_v21, %v583_v27  ;;  %v892_v39 = vpop.f32.mrb[7].mxu1 }
  0xfd   :  { %v665_v42 = vmul.f32 1.442695, %v640_v36 }
  0xfe   :  { %v667_v43 = vmul.f32 1.442695, %v641_v38 }
  0xff   :  { %962 = vpow2.f32 %v665_v42 }
 0x100   :  { %964 = vpow2.f32 %v667_v43  ;;  %v283_v54 = vpop.f32.mrb[8].mxu0 }
 0x101   :  { %v329_v55 = vpop.f32.mrb[8].mxu1  ;;  %v957_v56 = vpop.eup %956  ;;  %v584_v58 = vmul.f32 %v567_v47, %v283_v54  ;;  %v682_v54 = vrot.slane %v1191_v33, 5 }
 0x102   :  { %v585_v59 = vmul.f32 %v571_v51, %v329_v55  ;;  %v897_v60 = vpop.f32.mrb[9].mxu0  ;;  %v903_v61 = vpop.f32.mrb[9].mxu1  ;;  %v693_v9 = vmul.f32 %v957_v56, %v1191_v33  ;;  %v681_v51 = vrot.slane %v1191_v33, 4 }
 0x103   :  { %v959_v62 = vpop.eup %958  ;;  %v286_v2 = vpop.f32.mrb[10].mxu0  ;;  %v642_v5 = vmul.f32 %v617_v50, %v584_v58  ;;  %v706_v60 = vrot.slane %v1194_v46, 5 }
 0x104   :  { %v332_v3 = vpop.f32.mrb[10].mxu1  ;;  %v961_v4 = vpop.eup %960  ;;  %v643_v6 = vmul.f32 %v621_v52, %v585_v59  ;;  %v694_v10 = vmul.f32 %v959_v62, %v678_v48  ;;  %v717_v22 = vmul.f32 %v1194_v46, %v693_v9 }
 0x105   :  { %v898_v7 = vpop.f32.mrb[11].mxu0  ;;  %v904_v8 = vpop.f32.mrb[11].mxu1  ;;  %v669_v13 = vmul.f32 1.442695, %v642_v5  ;;  %v629_v20 = vrot.slane %v961_v4, %v1174_v44 }
 0x106   :  { %v671_v14 = vmul.f32 1.442695, %v643_v6  ;;  %v767_v15 = vrot.slane %v694_v10, 7  ;;  %v718_v16 = vmul.f32 %v702_v57, %v694_v10  ;;  %v705_v57 = vrot.slane %v1194_v46, 4 }
 0x107   :  { %966 = vpow2.f32 %v669_v13  ;;  %v683_v6 = vrot.slane %v1191_v33, 6 }
 0x108   :  { %v768_v21 = vsel %vm734_vm5, %v767_v15, %v693_v9  ;;  %v733_v23 = vrot.slane %v718_v16, 7  ;;  %968 = vpow2.f32 %v671_v14  ;;  %v375_v24 = vpop.f32.mrb[12].mxu0  ;;  %v684_v9 = vrot.slane %v1191_v33, 7 }
 0x109   :  { %v421_v25 = vpop.f32.mrb[12].mxu1  ;;  %v963_v27 = vpop.eup %962  ;;  %v586_v28 = vmul.f32 %v575_v17, %v375_v24  ;;  %v708_v15 = vrot.slane %v1194_v46, 7 }
 0x10a   :  { %v587_v29 = vmul.f32 %v579_v19, %v421_v25  ;;  %v909_v30 = vpop.f32.mrb[13].mxu0  ;;  %v915_v31 = vpop.f32.mrb[13].mxu1  ;;  %v735_v44 = vsel %vm734_vm5, %v733_v23, %v717_v22  ;;  %v695_v36 = vmul.f32 %v963_v27, %v679_v11 }
 0x10b   :  { %v965_v32 = vpop.eup %964  ;;  %v378_v34 = vpop.f32.mrb[14].mxu0  ;;  %v644_v38 = vmul.f32 %v625_v18, %v586_v28 }
 0x10c   :  { %v424_v35 = vpop.f32.mrb[14].mxu1  ;;  %v645_v39 = vmul.f32 %v629_v20, %v587_v29  ;;  %v910_v40 = vpop.f32.mrb[15].mxu0  ;;  %v696_v42 = vmul.f32 %v965_v32, %v680_v12  ;;  %v769_v43 = vrot.slane %v695_v36, 6  ;;  %v719_v45 = vmul.f32 %v703_v26, %v695_v36 }
 0x10d   :  { %v916_v41 = vpop.f32.mrb[15].mxu1  ;;  %v673_v47 = vmul.f32 1.442695, %v644_v38  ;;  %v707_v12 = vrot.slane %v1194_v46, 6 }
 0x10e   :  { %v675_v48 = vmul.f32 1.442695, %v645_v39  ;;  %v771_v49 = vrot.slane %v696_v42, 5  ;;  %v720_v50 = vmul.f32 %v704_v37, %v696_v42  ;;  %v770_v52 = vsel %vm737_vm6, %v769_v43, %v768_v21 }
 0x10f   :  { %v736_v53 = vrot.slane %v719_v45, 6  ;;  %970 = vpow2.f32 %v673_v47  ;;  %v655_v37 = vmul.f32 %v1191_v33, %v1194_v46 }
 0x110   :  { %v772_v55 = vsel %vm740_vm7, %v771_v49, %v770_v52  ;;  %v739_v56 = vrot.slane %v720_v50, 5  ;;  %972 = vpow2.f32 %v675_v48 }
 0x111   :  { %v738_v58 = vsel %vm737_vm6, %v736_v53, %v735_v44  ;;  %v967_v59 = vpop.eup %966  ;;  %v657_v44 = vsel %vm656_vm12, %v655_v37, 0.0 }
 0x112   :  { %v741_v61 = vsel %vm740_vm7, %v739_v56, %v738_v58  ;;  %v969_v62 = vpop.eup %968  ;;  %v697_v63 = vmul.f32 %v967_v59, %v681_v51  ;;  %v794_v56 = vld [vmem:[#allocation2] sm:$0x1] }
 0x113   :  { %v698_v1 = vmul.f32 %v969_v62, %v682_v54 }
 0x114   :  { %v773_v2 = vrot.slane %v697_v63, 4  ;;  %v721_v3 = vmul.f32 %v705_v57, %v697_v63  ;;  %v805_v57 = vld [vmem:[#allocation3] sm:$0x1] }
 0x115   :  { %v775_v4 = vrot.slane %v698_v1, 3  ;;  %v722_v5 = vmul.f32 %v706_v60, %v698_v1 }
 0x116   :  { %v774_v7 = vsel %vm743_vm8, %v773_v2, %v772_v55  ;;  %v742_v8 = vrot.slane %v721_v3, 4 }
 0x117   :  { %v776_v10 = vsel %vm746_vm9, %v775_v4, %v774_v7  ;;  %v745_v11 = vrot.slane %v722_v5, 3 }
 0x118   :  { %v744_v13 = vsel %vm743_vm8, %v742_v8, %v741_v61 }
 0x119   :  { %v971_v14 = vpop.eup %970  ;;  %v747_v16 = vsel %vm746_vm9, %v745_v11, %v744_v13 }
 0x11a   :  { %v973_v17 = vpop.eup %972  ;;  %v699_v18 = vmul.f32 %v971_v14, %v683_v6 }
 0x11b   :  { %v700_v19 = vmul.f32 %v973_v17, %v684_v9 }
 0x11c   :  { %v777_v20 = vrot.slane %v699_v18, 2  ;;  %v723_v21 = vmul.f32 %v707_v12, %v699_v18 }
 0x11d   :  { %v779_v22 = vrot.slane %v700_v19, 1  ;;  %v724_v23 = vmul.f32 %v708_v15, %v700_v19 }
 0x11e   :  { %v778_v24 = vsel %vm749_vm10, %v777_v20, %v776_v10  ;;  %v748_v25 = vrot.slane %v723_v21, 2 }
 0x11f   :  { %v780_v26 = vsel %vm752_vm11, %v779_v22, %v778_v24  ;;  %v751_v27 = vrot.slane %v724_v23, 1 }
 0x120   :  { %v782_v28 = vsel %vm656_vm12, %v780_v26, 0.0  ;;  %v750_v29 = vsel %vm749_vm10, %v748_v25, %v747_v16 }
 0x121   :  { %783 = vadd.xlane.f32.xlu1 %v782_v28  ;;  %v753_v30 = vsel %vm752_vm11, %v751_v27, %v750_v29 }
 0x122   :  { %v755_v31 = vsel %vm656_vm12, %v753_v30, 0.0 }
 0x125   :  { %756 = vadd.xlane.f32.xlu1 %v755_v31 }
 0x129   :  { %658 = vadd.xlane.f32.xlu1 %v657_v44 }
 0x1ae   :  { %v784_v32 = vpop.xlane.xlu1 %783 }
 0x1af   :  { %v785_v34 = vadd.f32 1e-10, %v784_v32 }
 0x1b1   :  { %974 = vrcp.f32 %v785_v34 }
 0x1b2   :  { %v757_v35 = vpop.xlane.xlu1 %756 }
 0x1b3   :  { %v758_v36 = vadd.f32 1e-10, %v757_v35 }
 0x1b6   :  { %v659_v41 = vpop.xlane.xlu1 %658 }
 0x1b7   :  { %vm660_vm1 = vcmp.gt.f32.partialorder %v659_v41, 0.0 }
 0x1bb   :  { %v975_v38 = vpop.eup %974 }
 0x1bc   :  { %v787_v39 = vmul.f32 %v975_v38, %v758_v36 }
 0x1be   :  { %976 = vlog2.f32 %v787_v39 }
 0x1c8   :  { %v977_v40 = vpop.eup %976 }
 0x1c9   :  { %v789_v33 = vmul.f32 0.6931472, %v977_v40 }
 0x1cb   :  { %v790_v46 = vsub.f32 0.0, %v789_v33 }
 0x1cd   :  { %vm791_vm14 = vweird.f32 %v790_v46 }
 0x1ce   :  { %vm792_vm0 = vmxor %vm791_vm14, %vm1034_vm15 }
 0x1cf   :  { %vm793_vm2 = vmand %vm660_vm1, %vm792_vm0 }
 0x1d0   :  { %v795_v42 = vsel %vm793_vm2, %v790_v46, 0.0  ;;  %v852_v43 = vsel %vm793_vm2, 1.0, %v1031_v0 }
 0x1d1   :  { %v796_v45 = vrot.slane %v795_v42, 4  ;;  %v808_v47 = vrot.slane %v852_v43, 4 }
 0x1d3   :  { %v797_v48 = vadd.f32 %v796_v45, %v795_v42  ;;  %v809_v49 = vadd.f32 %v852_v43, %v808_v47 }
 0x1d5   :  { %v798_v50 = vrot.slane %v797_v48, 2  ;;  %v810_v51 = vrot.slane %v809_v49, 2 }
 0x1d7   :  { %v799_v52 = vadd.f32 %v798_v50, %v797_v48  ;;  %v811_v53 = vadd.f32 %v810_v51, %v809_v49 }
 0x1d9   :  { %v800_v54 = vrot.slane %v799_v52, 1  ;;  %v812_v55 = vrot.slane %v811_v53, 1 }
 0x1db   :  { %v801_v58 = vadd.f32 %v800_v54, %v799_v52  ;;  %v813_v59 = vadd.f32 %v812_v55, %v811_v53 }
 0x1dd   :  { %v802_v60 = vadd.f32 %v801_v58, %v794_v56  ;;  %v814_v61 = vadd.f32 %v813_v59, %v805_v57 }
 0x1df   :  { %804 = vst.msk [vmem:[#allocation2] sm:$0x1] %vm37_vm13, %v802_v60  ;;  %815 = vst.msk [vmem:[#allocation3] sm:$0x1] %vm37_vm13, %v814_v61 }
 0x1e6   :  { %v820_v0 = vld [vmem:[#allocation3] sm:$0x1]  ;;  %v819_v1 = vld [vmem:[#allocation2] sm:$0x1] }
 0x1e7   :  { %v822_v62 = vmax.f32 %v820_v0, 1.0  ;;  %vm821_vm3 = vcmp.gt.f32.partialorder %v820_v0, 0.0 }
 0x1e9   :  { %978 = vrcp.f32 %v822_v62 }
 0x1f3   :  { %v979_v63 = vpop.eup %978 }
 0x1f4   :  { %v824_v2 = vmul.f32 %v979_v63, %v819_v1 }
 0x1f6   :  { %v825_v3 = vsel %vm821_vm3, %v824_v2, 0.0 }
 0x1f7   :  { %826 = vst.msk [vmem:[#allocation7] sm:$0x1] %vm37_vm13, %v825_v3 }
 0x1f8   :  { %1013 = shalt.err (!%p1010_p12)
}
 0x1f9   :  { %s1014_s25 = scalar_lea.hbm %s1252_s4, 16 }
 0x1fa   :  { %p1015_p13 = scmp.ne.s32.totalorder %s1252_s4, %s1014_s25  ;;  %p1018_p0 = scmp.lt.u32.totalorder %s1014_s25, %s1252_s4 }
 0x1fc   :  { %p1020_p1 = pnand %p1018_p0, %p1015_p13 }
 0x1fe   :  { %1023 = shalt.err (!%p1020_p1)
}
 0x1ff   :  { %836 = dma.vmem_to_hbm [thread:$0]  %s834_s20, 16, %s1252_s4, [#allocation6]  }
 0x200   :  { %1026 = dma.done.wait [#allocation6], 16  }
 0x201   :  { %1027 = vsyncadd [#allocation6], 4294967280 }
 0x202   :  { %840 = vsyncpa [#allocation5], 1 }
 0x203   :  { %841 = vsyncpa [#allocation6], 1 }

</bundles_post_ra>
